<compile_context>
chip_gen: v7x
topology: tpu7x:2x2x1
jax: 0.10.0
libtpu: 0.0.40
codegen_flags: <defaults>
</compile_context>

<pallas_src>
import jax
import jax.numpy as jnp
from jax.experimental import pallas as pl
from jax.experimental.pallas import tpu as pltpu


def _elementwise_kernel(x_ref, o_ref):
    # ((x + 5) - 2) * 3 / 2  folded to one fused mul+add (constants stay in
    # the input dtype; rounding may differ by a ulp from the unfolded chain
    # in bf16/fp16, well within tolerance).
    o_ref[...] = x_ref[...] * 1.5 + 4.5


def _run_2d(x2d, target_block_bytes):
    """pallas_call over a lane-dense (rows, lane) slab; lane % 128 == 0."""
    rows, lane = x2d.shape
    itemsize = jnp.dtype(x2d.dtype).itemsize
    total_bytes = rows * lane * itemsize

    # Packed sublane count: 8 for 32-bit, 16 for bf16/f16, 32 for int8.
    sub = max(8, 32 // itemsize)

    # ~target_block_bytes per tile, rounded down to a sublane multiple.
    target_rows = max(sub, (target_block_bytes // (lane * itemsize)) // sub * sub)
    tile_rows = min(target_rows, rows)

    # For arrays over ~1 MiB, guarantee >= 4 grid steps so read/write DMA
    # overlap across steps and v7x's two TensorCores both get blocks.
    if total_bytes > (1 << 20) and rows >= 4 * sub:
        tile_rows = min(tile_rows, max(sub, (rows // 4) // sub * sub))

    if tile_rows < rows:
        # When actually tiling (not full-dim), block rows must be a multiple
        # of the packed sublane count.
        tile_rows = max(sub, (tile_rows // sub) * sub)

    grid = (pl.cdiv(rows, tile_rows),)

    return pl.pallas_call(
        _elementwise_kernel,
        out_shape=jax.ShapeDtypeStruct((rows, lane), x2d.dtype),
        grid_spec=pltpu.PrefetchScalarGridSpec(
            num_scalar_prefetch=0,
            grid=grid,
            in_specs=[pl.BlockSpec((tile_rows, lane), lambda i: (i, 0))],
            out_specs=pl.BlockSpec((tile_rows, lane), lambda i: (i, 0)),
        ),
        compiler_params=pltpu.CompilerParams(
            dimension_semantics=("parallel",),
            # 4 MiB blocks, double-buffered in + out = 16 MiB: raise the
            # scoped-VMEM limit above v5e's 16 MiB default (<= physical VMEM
            # everywhere, incl. v7x's 64 MiB).
            vmem_limit_bytes=32 << 20,
        ),
    )(x2d)


def pt_module_forward(x, target_block_bytes=4 << 20):
    """y = ((x + 5) - 2) * 3 / 2, elementwise, via a Pallas TPU kernel."""
    if not jnp.issubdtype(x.dtype, jnp.floating):
        # torch.div true-divides (integer -> float promotion); compute in f32.
        x = x.astype(jnp.float32)

    orig_shape = x.shape
    n = x.size

    # Widest lane dim (multiple of 128) that divides n exactly -> the reshape
    # is a free re-view, no padding copy.
    lane = None
    for w in (2048, 1024, 512, 256, 128):
        if n > 0 and n % w == 0:
            lane = w
            break

    if lane is not None:
        out = _run_2d(x.reshape(n // lane, lane), target_block_bytes)
        return out.reshape(orig_shape)

    # Ragged size (n not a multiple of 128): kernel the 128-aligned prefix and
    # compute the tiny (<128 element) tail with plain jnp -- no full-size
    # pad + slice passes over HBM.
    x_flat = jnp.ravel(x)
    n_aligned = (n // 128) * 128
    tail = x_flat[n_aligned:] * 1.5 + 4.5
    if n_aligned == 0:
        # Degenerate tiny tensor (< 128 elements): nothing worth kerneling.
        return tail.reshape(orig_shape)
    head = _run_2d(
        x_flat[:n_aligned].reshape(n_aligned // 128, 128), target_block_bytes
    ).reshape(-1)
    return jnp.concatenate([head, tail]).reshape(orig_shape)


def _ref(x):
    if not jnp.issubdtype(x.dtype, jnp.floating):
        x = x.astype(jnp.float32)
    return ((x + 5.0) - 2.0) * 3.0 / 2.0


if __name__ == "__main__":
    key = jax.random.PRNGKey(0)

    # Primary small input consistent with the module's elementwise forward.
    x = jax.random.normal(key, (2, 4, 16, 16), dtype=jnp.float32)
    y = jax.block_until_ready(pt_module_forward(x))
    assert y.shape == x.shape and y.dtype == x.dtype
    assert jnp.allclose(y, _ref(x), atol=1e-5, rtol=1e-5)

    # Mid-size aligned input: exercises the multi-step (pipelined / megacore)
    # grid path.
    x2 = jax.random.normal(jax.random.PRNGKey(1), (512, 2048), dtype=jnp.float32)
    y2 = jax.block_until_ready(pt_module_forward(x2))
    assert jnp.allclose(y2, _ref(x2), atol=1e-5, rtol=1e-5)

    # Ragged (non-128-multiple) element count: aligned-prefix kernel + jnp tail.
    x3 = jax.random.normal(jax.random.PRNGKey(2), (7, 33), dtype=jnp.float32)
    y3 = jax.block_until_ready(pt_module_forward(x3))
    assert y3.shape == x3.shape
    assert jnp.allclose(y3, _ref(x3), atol=1e-5, rtol=1e-5)

    # Integer input: promoted to float32, matching torch.div semantics.
    x4 = jnp.arange(2 * 4 * 16 * 16, dtype=jnp.int32).reshape(2, 4, 16, 16)
    y4 = jax.block_until_ready(pt_module_forward(x4))
    assert y4.dtype == jnp.float32
    assert jnp.allclose(y4, _ref(x4), atol=1e-5, rtol=1e-5)

    print("KERNEL_OK")
</pallas_src>

<mosaic_0001>
module attributes {stable_mosaic.version = 11 : i64} {
  func.func @_elementwise_kernel(%arg0: i32, %arg1: memref<1x2048xf32, #tpu.memory_space<vmem>>, %arg2: memref<1x2048xf32, #tpu.memory_space<vmem>>) attributes {dimension_semantics = [#tpu.dimension_semantics<parallel>], iteration_bounds = array<i64: 1>, scalar_prefetch = 0 : i64, scratch_operands = 0 : i64, tpu.core_type = #tpu.core_type<tc>, window_params = [{transform_indices = @transform_0, window_bounds = array<i64: 1, 2048>}, {transform_indices = @transform_1, window_bounds = array<i64: 1, 2048>}]} {
    %c0 = arith.constant 0 : index
    %c0_0 = arith.constant 0 : index
    %0 = vector.load %arg1[%c0, %c0_0] : memref<1x2048xf32, #tpu.memory_space<vmem>>, vector<1x2048xf32>
    %cst = arith.constant 1.500000e+00 : f32
    %1 = vector.broadcast %cst : f32 to vector<1x2048xf32>
    %2 = arith.mulf %0, %1 : vector<1x2048xf32>
    %cst_1 = arith.constant 4.500000e+00 : f32
    %3 = vector.broadcast %cst_1 : f32 to vector<1x2048xf32>
    %4 = arith.addf %2, %3 : vector<1x2048xf32>
    %c0_2 = arith.constant 0 : index
    %c0_3 = arith.constant 0 : index
    %5 = vector.load %arg2[%c0_2, %c0_3] : memref<1x2048xf32, #tpu.memory_space<vmem>>, vector<1x2048xf32>
    tpu.vector_store %arg2[%c0_2, %c0_3], %4 {strides = array<i32>} : memref<1x2048xf32, #tpu.memory_space<vmem>>, vector<1x2048xf32>,
    return
  }
  func.func @transform_0(%arg0: i32) -> (i32, i32) {
    %c0_i32 = arith.constant 0 : i32
    %c0_i32_0 = arith.constant 0 : i32
    return %arg0, %c0_i32 : i32, i32
  }
  func.func @transform_1(%arg0: i32) -> (i32, i32) {
    %c0_i32 = arith.constant 0 : i32
    %c0_i32_0 = arith.constant 0 : i32
    return %arg0, %c0_i32 : i32, i32
  }
}

</mosaic_0001>

<bundles_post_ra>
// kernel: tpu_custom_call.1
= control target key start
LH: loop header
LB: loop body
LE: loop exit
PB: predicated region body
PF: predicated region fallthrough
CT: control target
= control target key end

     0   :  { %6 = vsyncpa [#allocation3], 0  ;;  %s130_s0 = inlined_call_operand.hbm [shape: f32[1,2048], index: 0, kind: input, shape index: {}]   ;;  %s131_s1 = inlined_call_operand.hbm [shape: f32[1,2048], index: 1, kind: output, shape index: {}]  }
   0x1   :  { %7 = vsyncpa [#allocation4], 0  ;;  %s94_s6 = smov [#allocation2]   ;;  %s46_s10 = scalar_lea.hbm %s130_s0, 256 }
   0x2   :  { %s14_s7 = sshll.u32 %s94_s6, 4  ;;  %p47_p0 = scmp.ne.s32.totalorder %s130_s0, %s46_s10  ;;  %s15_s7 = int_to_ptr.vmem [resolvable:$true] %s14_s7 }
   0x3   :  { %p50_p1 = scmp.lt.u32.totalorder %s46_s10, %s130_s0 }
   0x5   :  { %p52_p2 = pnand %p50_p1, %p47_p0 }
   0x7   :  { %55 = shalt.err (!%p52_p2)
}
   0x8   :  { %s56_s15 = scalar_lea.vmem %s15_s7, 256  ;;  %p61_p4 = scmp.lt.s32.totalorder %s15_s7, %s15_s7 }
   0x9   :  { %p57_p3 = scmp.ne.s32.totalorder %s15_s7, %s56_s15  ;;  %p62_p5 = scmp.lt.s32.totalorder %s56_s15, %s56_s15 }
   0xb   :  { %p63_p6 = por %p62_p5, %p61_p4 }
   0xd   :  { %p64_p7 = pnand %p63_p6, %p57_p3 }
   0xf   :  { %67 = shalt.err (!%p64_p7)
}
  0x10   :  { %17 = dma.hbm_to_vmem [thread:$0]  %s130_s0, 256, %s15_s7, [#allocation3]  }
  0x11   :  { %90 = dma.done.wait [#allocation3], 256  }
  0x12   :  { %91 = vsyncadd [#allocation3], 4294967040  ;;  %v21_v0 = vld [vmem:[#allocation2] sm:$0xff]  ;;  %v22_v1 = vld [vmem:[#allocation2 + $0x8] sm:$0xff]  ;;  %s95_s18 = smov [#allocation5]  }
  0x13   :  { %s35_s19 = sshll.u32 %s95_s18, 4  ;;  %v23_v2 = vmul.f32 1.5, %v21_v0  ;;  %v24_v3 = vmul.f32 1.5, %v22_v1  ;;  %s36_s19 = int_to_ptr.vmem [resolvable:$true] %s35_s19 }
  0x14   :  { %s68_s20 = scalar_lea.vmem %s36_s19, 256  ;;  %p73_p9 = scmp.lt.s32.totalorder %s36_s19, %s36_s19 }
  0x15   :  { %v25_v4 = vadd.f32 4.5, %v23_v2  ;;  %v26_v5 = vadd.f32 4.5, %v24_v3  ;;  %p69_p8 = scmp.ne.s32.totalorder %s36_s19, %s68_s20  ;;  %p74_p10 = scmp.lt.s32.totalorder %s68_s20, %s68_s20 }
  0x17   :  { %27 = vst [vmem:[#allocation5] sm:$0xff] %v25_v4  ;;  %28 = vst [vmem:[#allocation5 + $0x8] sm:$0xff] %v26_v5  ;;  %p75_p11 = por %p74_p10, %p73_p9 }
  0x19   :  { %p76_p12 = pnand %p75_p11, %p69_p8 }
  0x1b   :  { %79 = shalt.err (!%p76_p12)
}
  0x1c   :  { %s80_s22 = scalar_lea.hbm %s131_s1, 256 }
  0x1d   :  { %p81_p13 = scmp.ne.s32.totalorder %s131_s1, %s80_s22  ;;  %p84_p0 = scmp.lt.u32.totalorder %s80_s22, %s131_s1 }
  0x1f   :  { %p86_p1 = pnand %p84_p0, %p81_p13 }
  0x21   :  { %89 = shalt.err (!%p86_p1)
}
  0x22   :  { %38 = dma.vmem_to_hbm [thread:$0]  %s36_s19, 256, %s131_s1, [#allocation4]  }
  0x23   :  { %92 = dma.done.wait [#allocation4], 256  }
  0x24   :  { %93 = vsyncadd [#allocation4], 4294967040 }
  0x25   :  { %42 = vsyncpa [#allocation3], 1 }
  0x26   :  { %43 = vsyncpa [#allocation4], 1 }

</bundles_post_ra>
